<compile_context>
chip_gen: v7x
topology: tpu7x:2x2x1
jax: 0.10.0
libtpu: 0.0.40
codegen_flags: <defaults>
</compile_context>

<pallas_src>
import jax
import jax.numpy as jnp
from jax.experimental import pallas as pl
from jax.experimental.pallas import tpu as pltpu


MATMUL_DTYPE = jnp.bfloat16  # MXU operand dtype; accumulation is always f32.


def _round_up(x, m):
    return (x + m - 1) // m * m


def qmix_kernel(x_ref, h_ref, w1_ref, b1_ref, wi_ref, bi_ref, wh_ref, bh_ref,
                w2_ref, b2_ref, q_ref, hout_ref):
    H = h_ref.shape[1]

    # In-kernel bf16 cast (hides under the matmul; no wrapper-side HBM trip).
    x = x_ref[...].astype(MATMUL_DTYPE)     # (TB, D_in)
    h_in = h_ref[...]                       # (TB, H) f32

    # ---- fc1 + ReLU (f32 accumulate, f32 elementwise) ----
    a1 = jnp.dot(x, w1_ref[...], preferred_element_type=jnp.float32) + b1_ref[...]
    a1 = jnp.maximum(a1, 0.0)

    # ---- GRU gates: two matmuls, gates laid out [r | z | n] ----
    gi = jnp.dot(a1.astype(MATMUL_DTYPE), wi_ref[...],
                 preferred_element_type=jnp.float32) + bi_ref[...]
    gh = jnp.dot(h_in.astype(MATMUL_DTYPE), wh_ref[...],
                 preferred_element_type=jnp.float32) + bh_ref[...]

    r = jax.nn.sigmoid(gi[:, 0 * H:1 * H] + gh[:, 0 * H:1 * H])
    z = jax.nn.sigmoid(gi[:, 1 * H:2 * H] + gh[:, 1 * H:2 * H])
    n = jnp.tanh(gi[:, 2 * H:3 * H] + r * gh[:, 2 * H:3 * H])
    h_new = n + z * (h_in - n)              # == (1 - z) * n + z * h_in

    # ---- fc2 (output lanes padded to a multiple of 128; lane-dense store) ----
    q = jnp.dot(h_new.astype(MATMUL_DTYPE), w2_ref[...],
                preferred_element_type=jnp.float32) + b2_ref[...]

    q_ref[...] = q.astype(q_ref.dtype)      # bf16 store: halves dominant writeback
    hout_ref[...] = h_new                   # f32: feeds the recurrence


def qmix_forward(inputs, hidden_state, params, *, batch_tile=1024):
    """inputs: (B, D_in) f32; hidden_state: (..., H)-reshapeable f32."""
    D_in, H = params["w1"].shape
    A = params["w2"].shape[1]
    A_pad = _round_up(A, 128)

    x = inputs.astype(jnp.float32)                      # cast to bf16 in-kernel
    h_in = hidden_state.reshape(-1, H).astype(jnp.float32)
    B = x.shape[0]

    # --- fuse / pad / cast weights (cheap; constant-folds under jit) ---
    w1 = params["w1"].astype(MATMUL_DTYPE)
    b1 = params["b1"].astype(jnp.float32)
    wi = jnp.concatenate([params["wir"], params["wiz"], params["win"]],
                         axis=1).astype(MATMUL_DTYPE)           # (H, 3H)
    bi = jnp.concatenate([params["bir"], params["biz"], params["bin"]],
                         axis=1).astype(jnp.float32)            # (1, 3H)
    wh = jnp.concatenate([params["whr"], params["whz"], params["whn"]],
                         axis=1).astype(MATMUL_DTYPE)           # (H, 3H)
    bh = jnp.concatenate([params["bhr"], params["bhz"], params["bhn"]],
                         axis=1).astype(jnp.float32)            # (1, 3H)
    w2 = jnp.pad(params["w2"], ((0, 0), (0, A_pad - A))).astype(MATMUL_DTYPE)
    b2 = jnp.pad(params["b2"], ((0, 0), (0, A_pad - A))).astype(jnp.float32)

    # --- adaptive batch tiling ---
    #  * TB is a multiple of 16 (bf16 packs 2 rows / sublane).
    #  * TB chosen from cdiv(B, n_steps) so padding waste is <= 15 rows.
    #  * n_steps >= 2 whenever B >= 32 so the "parallel" grid axis can be
    #    sharded across the two TensorCores on v7x (free on v5e/v6e).
    n_steps = pl.cdiv(B, batch_tile)
    if B >= 32:
        n_steps = max(n_steps, 2)
    TB = _round_up(pl.cdiv(B, n_steps), 16)
    B_pad = _round_up(B, TB)
    if B_pad != B:
        x = jnp.pad(x, ((0, B_pad - B), (0, 0)))
        h_in = jnp.pad(h_in, ((0, B_pad - B), (0, 0)))
    grid = (B_pad // TB,)

    def batch_spec(shape):
        return pl.BlockSpec(shape, lambda i: (i, 0))

    def full_spec(arr):
        return pl.BlockSpec(arr.shape, lambda i: (0, 0))

    # --- explicit VMEM limit (2x buffers on activations + weights, + margin) ---
    act_bytes = TB * (D_in * 4 + H * 4 + A_pad * 2 + H * 4)
    weight_bytes = (w1.size * 2 + b1.size * 4 + wi.size * 2 + bi.size * 4
                    + wh.size * 2 + bh.size * 4 + w2.size * 2 + b2.size * 4)
    vmem_limit = 2 * (2 * act_bytes + 2 * weight_bytes) + (8 << 20)
    vmem_limit = int(min(max(vmem_limit, 16 << 20), 64 << 20))

    flops = 2 * B_pad * (D_in * H + 2 * H * (3 * H) + H * A_pad)
    bytes_accessed = (x.size * 4 + h_in.size * 4 + weight_bytes
                      + B_pad * A_pad * 2 + B_pad * H * 4)

    q_pad, h_new = pl.pallas_call(
        qmix_kernel,
        out_shape=(
            jax.ShapeDtypeStruct((B_pad, A_pad), jnp.bfloat16),
            jax.ShapeDtypeStruct((B_pad, H), jnp.float32),
        ),
        grid=grid,
        in_specs=[
            batch_spec((TB, D_in)),   # x
            batch_spec((TB, H)),      # h_in
            full_spec(w1), full_spec(b1),
            full_spec(wi), full_spec(bi),
            full_spec(wh), full_spec(bh),
            full_spec(w2), full_spec(b2),
        ],
        out_specs=(
            batch_spec((TB, A_pad)),
            batch_spec((TB, H)),
        ),
        compiler_params=pltpu.CompilerParams(
            dimension_semantics=("parallel",),
            vmem_limit_bytes=vmem_limit),
        cost_estimate=pl.CostEstimate(
            flops=flops,
            transcendentals=3 * B_pad * H,
            bytes_accessed=bytes_accessed),
    )(x, h_in, w1, b1, wi, bi, wh, bh, w2, b2)

    # Padded rows are garbage by construction; slice them off before anything
    # (e.g. an aliased hidden-state buffer) could observe them.
    q = q_pad[:B, :A].astype(jnp.float32)
    return q, h_new[:B]


def init_params(key, d_in, n_hidden, n_actions):
    ks = jax.random.split(key, 16)
    u = lambda k, shape, bound: jax.random.uniform(
        k, shape, jnp.float32, -bound, bound)
    b1 = 1.0 / jnp.sqrt(d_in)
    bh = 1.0 / jnp.sqrt(n_hidden)
    return {
        "w1": u(ks[0], (d_in, n_hidden), b1),
        "b1": u(ks[1], (1, n_hidden), b1),
        "wir": u(ks[2], (n_hidden, n_hidden), bh),
        "wiz": u(ks[3], (n_hidden, n_hidden), bh),
        "win": u(ks[4], (n_hidden, n_hidden), bh),
        "bir": u(ks[5], (1, n_hidden), bh),
        "biz": u(ks[6], (1, n_hidden), bh),
        "bin": u(ks[7], (1, n_hidden), bh),
        "whr": u(ks[8], (n_hidden, n_hidden), bh),
        "whz": u(ks[9], (n_hidden, n_hidden), bh),
        "whn": u(ks[10], (n_hidden, n_hidden), bh),
        "bhr": u(ks[11], (1, n_hidden), bh),
        "bhz": u(ks[12], (1, n_hidden), bh),
        "bhn": u(ks[13], (1, n_hidden), bh),
        "w2": u(ks[14], (n_hidden, n_actions), bh),
        "b2": u(ks[15], (1, n_actions), bh),
    }


def qmix_forward_ref(inputs, hidden_state, params):
    """Pure-JAX reference mirroring the PyTorch module (bf16 matmul operands)."""
    H = params["w1"].shape[1]
    h_in = hidden_state.reshape(-1, H).astype(jnp.float32)
    c = lambda t: t.astype(MATMUL_DTYPE)
    dot = lambda a, b: jnp.dot(c(a), c(b), preferred_element_type=jnp.float32)

    a1 = jnp.maximum(dot(inputs, params["w1"]) + params["b1"], 0.0)
    r = jax.nn.sigmoid(dot(a1, params["wir"]) + params["bir"]
                       + dot(h_in, params["whr"]) + params["bhr"])
    z = jax.nn.sigmoid(dot(a1, params["wiz"]) + params["biz"]
                       + dot(h_in, params["whz"]) + params["bhz"])
    n = jnp.tanh(dot(a1, params["win"]) + params["bin"]
                 + r * (dot(h_in, params["whn"]) + params["bhn"]))
    h = (1.0 - z) * n + z * h_in
    q = dot(h, params["w2"]) + params["b2"]
    return q, h


if __name__ == "__main__":
    B, D_IN, N_HIDDEN, N_ACTIONS = 8, 32, 32, 16

    key = jax.random.PRNGKey(0)
    k_in, k_h, k_p = jax.random.split(key, 3)
    inputs = jax.random.normal(k_in, (B, D_IN), jnp.float32)
    hidden = jax.random.normal(k_h, (B, N_HIDDEN), jnp.float32)
    params = init_params(k_p, D_IN, N_HIDDEN, N_ACTIONS)

    q, h = qmix_forward(inputs, hidden, params)
    q = jax.block_until_ready(q)
    h = jax.block_until_ready(h)

    q_ref, h_ref = qmix_forward_ref(inputs, hidden, params)
    assert q.shape == (B, N_ACTIONS) and h.shape == (B, N_HIDDEN)
    assert jnp.allclose(q, q_ref, atol=2e-2, rtol=2e-2)
    assert jnp.allclose(h, h_ref, atol=1e-2, rtol=1e-2)

    print("KERNEL_OK")
</pallas_src>

<mosaic_0001>
module attributes {stable_mosaic.version = 11 : i64} {
  func.func @qmix_kernel(%arg0: i32, %arg1: memref<16x32xf32, #tpu.memory_space<vmem>>, %arg2: memref<16x32xf32, #tpu.memory_space<vmem>>, %arg3: memref<32x32xbf16, #tpu.memory_space<vmem>>, %arg4: memref<1x32xf32, #tpu.memory_space<vmem>>, %arg5: memref<32x96xbf16, #tpu.memory_space<vmem>>, %arg6: memref<1x96xf32, #tpu.memory_space<vmem>>, %arg7: memref<32x96xbf16, #tpu.memory_space<vmem>>, %arg8: memref<1x96xf32, #tpu.memory_space<vmem>>, %arg9: memref<32x128xbf16, #tpu.memory_space<vmem>>, %arg10: memref<1x128xf32, #tpu.memory_space<vmem>>, %arg11: memref<16x128xbf16, #tpu.memory_space<vmem>>, %arg12: memref<16x32xf32, #tpu.memory_space<vmem>>) attributes {dimension_semantics = [#tpu.dimension_semantics<parallel>], iteration_bounds = array<i64: 1>, scalar_prefetch = 0 : i64, scratch_operands = 0 : i64, tpu.core_type = #tpu.core_type<tc>, window_params = [{transform_indices = @transform_0, window_bounds = array<i64: 16, 32>}, {transform_indices = @transform_1, window_bounds = array<i64: 16, 32>}, {pipeline_mode = #tpu.pipeline_mode<synchronous>, transform_indices = @transform_2, window_bounds = array<i64: 32, 32>}, {pipeline_mode = #tpu.pipeline_mode<synchronous>, transform_indices = @transform_3, window_bounds = array<i64: 1, 32>}, {pipeline_mode = #tpu.pipeline_mode<synchronous>, transform_indices = @transform_4, window_bounds = array<i64: 32, 96>}, {pipeline_mode = #tpu.pipeline_mode<synchronous>, transform_indices = @transform_5, window_bounds = array<i64: 1, 96>}, {pipeline_mode = #tpu.pipeline_mode<synchronous>, transform_indices = @transform_6, window_bounds = array<i64: 32, 96>}, {pipeline_mode = #tpu.pipeline_mode<synchronous>, transform_indices = @transform_7, window_bounds = array<i64: 1, 96>}, {pipeline_mode = #tpu.pipeline_mode<synchronous>, transform_indices = @transform_8, window_bounds = array<i64: 32, 128>}, {pipeline_mode = #tpu.pipeline_mode<synchronous>, transform_indices = @transform_9, window_bounds = array<i64: 1, 128>}, {transform_indices = @transform_10, window_bounds = array<i64: 16, 128>}, {transform_indices = @transform_11, window_bounds = array<i64: 16, 32>}]} {
    %c0 = arith.constant 0 : index
    %c0_0 = arith.constant 0 : index
    %0 = vector.load %arg1[%c0, %c0_0] : memref<16x32xf32, #tpu.memory_space<vmem>>, vector<16x32xf32>
    %1 = arith.truncf %0 : vector<16x32xf32> to vector<16x32xbf16>
    %c0_1 = arith.constant 0 : index
    %c0_2 = arith.constant 0 : index
    %2 = vector.load %arg2[%c0_1, %c0_2] : memref<16x32xf32, #tpu.memory_space<vmem>>, vector<16x32xf32>
    %c0_3 = arith.constant 0 : index
    %c0_4 = arith.constant 0 : index
    %3 = vector.load %arg3[%c0_3, %c0_4] : memref<32x32xbf16, #tpu.memory_space<vmem>>, vector<32x32xbf16>
    %cst = arith.constant dense<0.000000e+00> : vector<16x32xf32>
    %4 = tpu.matmul %1, %3, %cst {dimension_numbers = #tpu.dot_dimension_numbers<[1], [0], [0], [1], [0, 0, 1, 1], [], []>} : vector<16x32xbf16>, vector<32x32xbf16>, vector<16x32xf32> -> vector<16x32xf32>
    %c0_5 = arith.constant 0 : index
    %c0_6 = arith.constant 0 : index
    %5 = vector.load %arg4[%c0_5, %c0_6] : memref<1x32xf32, #tpu.memory_space<vmem>>, vector<1x32xf32>
    %6 = vector.broadcast %5 : vector<1x32xf32> to vector<16x32xf32>
    %7 = arith.addf %4, %6 : vector<16x32xf32>
    %cst_7 = arith.constant 0.000000e+00 : f32
    %8 = vector.broadcast %cst_7 : f32 to vector<16x32xf32>
    %9 = arith.maximumf %7, %8 : vector<16x32xf32>
    %10 = arith.truncf %9 : vector<16x32xf32> to vector<16x32xbf16>
    %c0_8 = arith.constant 0 : index
    %c0_9 = arith.constant 0 : index
    %11 = vector.load %arg5[%c0_8, %c0_9] : memref<32x96xbf16, #tpu.memory_space<vmem>>, vector<32x96xbf16>
    %cst_10 = arith.constant dense<0.000000e+00> : vector<16x96xf32>
    %12 = tpu.matmul %10, %11, %cst_10 {dimension_numbers = #tpu.dot_dimension_numbers<[1], [0], [0], [1], [0, 0, 1, 1], [], []>} : vector<16x32xbf16>, vector<32x96xbf16>, vector<16x96xf32> -> vector<16x96xf32>
    %c0_11 = arith.constant 0 : index
    %c0_12 = arith.constant 0 : index
    %13 = vector.load %arg6[%c0_11, %c0_12] : memref<1x96xf32, #tpu.memory_space<vmem>>, vector<1x96xf32>
    %14 = vector.broadcast %13 : vector<1x96xf32> to vector<16x96xf32>
    %15 = arith.addf %12, %14 : vector<16x96xf32>
    %16 = arith.truncf %2 : vector<16x32xf32> to vector<16x32xbf16>
    %c0_13 = arith.constant 0 : index
    %c0_14 = arith.constant 0 : index
    %17 = vector.load %arg7[%c0_13, %c0_14] : memref<32x96xbf16, #tpu.memory_space<vmem>>, vector<32x96xbf16>
    %cst_15 = arith.constant dense<0.000000e+00> : vector<16x96xf32>
    %18 = tpu.matmul %16, %17, %cst_15 {dimension_numbers = #tpu.dot_dimension_numbers<[1], [0], [0], [1], [0, 0, 1, 1], [], []>} : vector<16x32xbf16>, vector<32x96xbf16>, vector<16x96xf32> -> vector<16x96xf32>
    %c0_16 = arith.constant 0 : index
    %c0_17 = arith.constant 0 : index
    %19 = vector.load %arg8[%c0_16, %c0_17] : memref<1x96xf32, #tpu.memory_space<vmem>>, vector<1x96xf32>
    %20 = vector.broadcast %19 : vector<1x96xf32> to vector<16x96xf32>
    %21 = arith.addf %18, %20 : vector<16x96xf32>
    %22 = vector.extract_strided_slice %15 {offsets = [0, 0], sizes = [16, 32], strides = [1, 1]} : vector<16x96xf32> to vector<16x32xf32>
    %23 = vector.extract_strided_slice %21 {offsets = [0, 0], sizes = [16, 32], strides = [1, 1]} : vector<16x96xf32> to vector<16x32xf32>
    %24 = arith.addf %22, %23 : vector<16x32xf32>
    %25 = arith.negf %24 : vector<16x32xf32>
    %26 = math.exp %25 : vector<16x32xf32>
    %cst_18 = arith.constant 1.000000e+00 : f32
    %27 = vector.broadcast %cst_18 : f32 to vector<16x32xf32>
    %28 = arith.addf %27, %26 : vector<16x32xf32>
    %29 = arith.divf %27, %28 : vector<16x32xf32>
    %30 = vector.extract_strided_slice %15 {offsets = [0, 32], sizes = [16, 32], strides = [1, 1]} : vector<16x96xf32> to vector<16x32xf32>
    %31 = vector.extract_strided_slice %21 {offsets = [0, 32], sizes = [16, 32], strides = [1, 1]} : vector<16x96xf32> to vector<16x32xf32>
    %32 = arith.addf %30, %31 : vector<16x32xf32>
    %33 = arith.negf %32 : vector<16x32xf32>
    %34 = math.exp %33 : vector<16x32xf32>
    %cst_19 = arith.constant 1.000000e+00 : f32
    %35 = vector.broadcast %cst_19 : f32 to vector<16x32xf32>
    %36 = arith.addf %35, %34 : vector<16x32xf32>
    %37 = arith.divf %35, %36 : vector<16x32xf32>
    %38 = vector.extract_strided_slice %15 {offsets = [0, 64], sizes = [16, 32], strides = [1, 1]} : vector<16x96xf32> to vector<16x32xf32>
    %39 = vector.extract_strided_slice %21 {offsets = [0, 64], sizes = [16, 32], strides = [1, 1]} : vector<16x96xf32> to vector<16x32xf32>
    %40 = arith.mulf %29, %39 : vector<16x32xf32>
    %41 = arith.addf %38, %40 : vector<16x32xf32>
    %42 = math.tanh %41 : vector<16x32xf32>
    %43 = arith.subf %2, %42 : vector<16x32xf32>
    %44 = arith.mulf %37, %43 : vector<16x32xf32>
    %45 = arith.addf %42, %44 : vector<16x32xf32>
    %46 = arith.truncf %45 : vector<16x32xf32> to vector<16x32xbf16>
    %c0_20 = arith.constant 0 : index
    %c0_21 = arith.constant 0 : index
    %47 = vector.load %arg9[%c0_20, %c0_21] : memref<32x128xbf16, #tpu.memory_space<vmem>>, vector<32x128xbf16>
    %cst_22 = arith.constant dense<0.000000e+00> : vector<16x128xf32>
    %48 = tpu.matmul %46, %47, %cst_22 {dimension_numbers = #tpu.dot_dimension_numbers<[1], [0], [0], [1], [0, 0, 1, 1], [], []>} : vector<16x32xbf16>, vector<32x128xbf16>, vector<16x128xf32> -> vector<16x128xf32>
    %c0_23 = arith.constant 0 : index
    %c0_24 = arith.constant 0 : index
    %49 = vector.load %arg10[%c0_23, %c0_24] : memref<1x128xf32, #tpu.memory_space<vmem>>, vector<1x128xf32>
    %50 = vector.broadcast %49 : vector<1x128xf32> to vector<16x128xf32>
    %51 = arith.addf %48, %50 : vector<16x128xf32>
    %52 = arith.truncf %51 : vector<16x128xf32> to vector<16x128xbf16>
    %c0_25 = arith.constant 0 : index
    %c0_26 = arith.constant 0 : index
    %53 = vector.load %arg11[%c0_25, %c0_26] : memref<16x128xbf16, #tpu.memory_space<vmem>>, vector<16x128xbf16>
    tpu.vector_store %arg11[%c0_25, %c0_26], %52 {strides = array<i32>} : memref<16x128xbf16, #tpu.memory_space<vmem>>, vector<16x128xbf16>,
    %c0_27 = arith.constant 0 : index
    %c0_28 = arith.constant 0 : index
    %54 = vector.load %arg12[%c0_27, %c0_28] : memref<16x32xf32, #tpu.memory_space<vmem>>, vector<16x32xf32>
    tpu.vector_store %arg12[%c0_27, %c0_28], %45 {strides = array<i32>} : memref<16x32xf32, #tpu.memory_space<vmem>>, vector<16x32xf32>,
    return
  }
  func.func @transform_0(%arg0: i32) -> (i32, i32) {
    %c0_i32 = arith.constant 0 : i32
    %c0_i32_0 = arith.constant 0 : i32
    return %arg0, %c0_i32 : i32, i32
  }
  func.func @transform_1(%arg0: i32) -> (i32, i32) {
    %c0_i32 = arith.constant 0 : i32
    %c0_i32_0 = arith.constant 0 : i32
    return %arg0, %c0_i32 : i32, i32
  }
  func.func @transform_2(%arg0: i32) -> (i32, i32) {
    %c0_i32 = arith.constant 0 : i32
    %c0_i32_0 = arith.constant 0 : i32
    %c0_i32_1 = arith.constant 0 : i32
    return %c0_i32, %c0_i32_0 : i32, i32
  }
  func.func @transform_3(%arg0: i32) -> (i32, i32) {
    %c0_i32 = arith.constant 0 : i32
    %c0_i32_0 = arith.constant 0 : i32
    %c0_i32_1 = arith.constant 0 : i32
    return %c0_i32, %c0_i32_0 : i32, i32
  }
  func.func @transform_4(%arg0: i32) -> (i32, i32) {
    %c0_i32 = arith.constant 0 : i32
    %c0_i32_0 = arith.constant 0 : i32
    %c0_i32_1 = arith.constant 0 : i32
    return %c0_i32, %c0_i32_0 : i32, i32
  }
  func.func @transform_5(%arg0: i32) -> (i32, i32) {
    %c0_i32 = arith.constant 0 : i32
    %c0_i32_0 = arith.constant 0 : i32
    %c0_i32_1 = arith.constant 0 : i32
    return %c0_i32, %c0_i32_0 : i32, i32
  }
  func.func @transform_6(%arg0: i32) -> (i32, i32) {
    %c0_i32 = arith.constant 0 : i32
    %c0_i32_0 = arith.constant 0 : i32
    %c0_i32_1 = arith.constant 0 : i32
    return %c0_i32, %c0_i32_0 : i32, i32
  }
  func.func @transform_7(%arg0: i32) -> (i32, i32) {
    %c0_i32 = arith.constant 0 : i32
    %c0_i32_0 = arith.constant 0 : i32
    %c0_i32_1 = arith.constant 0 : i32
    return %c0_i32, %c0_i32_0 : i32, i32
  }
  func.func @transform_8(%arg0: i32) -> (i32, i32) {
    %c0_i32 = arith.constant 0 : i32
    %c0_i32_0 = arith.constant 0 : i32
    %c0_i32_1 = arith.constant 0 : i32
    return %c0_i32, %c0_i32_0 : i32, i32
  }
  func.func @transform_9(%arg0: i32) -> (i32, i32) {
    %c0_i32 = arith.constant 0 : i32
    %c0_i32_0 = arith.constant 0 : i32
    %c0_i32_1 = arith.constant 0 : i32
    return %c0_i32, %c0_i32_0 : i32, i32
  }
  func.func @transform_10(%arg0: i32) -> (i32, i32) {
    %c0_i32 = arith.constant 0 : i32
    %c0_i32_0 = arith.constant 0 : i32
    return %arg0, %c0_i32 : i32, i32
  }
  func.func @transform_11(%arg0: i32) -> (i32, i32) {
    %c0_i32 = arith.constant 0 : i32
    %c0_i32_0 = arith.constant 0 : i32
    return %arg0, %c0_i32 : i32, i32
  }
}

</mosaic_0001>

<bundles_post_ra>
// kernel: tpu_custom_call.1
= control target key start
LH: loop header
LB: loop body
LE: loop exit
PB: predicated region body
PF: predicated region fallthrough
CT: control target
= control target key end

     0   :  { %17 = vsyncpa [#allocation3], 0  ;;  %s1016_s0 = inlined_call_operand.hbm [shape: f32[16,32], index: 0, kind: input, shape index: {}]   ;;  %s1017_s1 = inlined_call_operand.hbm [shape: f32[16,32], index: 1, kind: input, shape index: {}]   ;;  %s1018_s2 = inlined_call_operand.hbm [shape: bf16[32,32], index: 2, kind: input, shape index: {}]   ;;  %s1019_s3 = inlined_call_operand.vmem [shape: f32[1,32], index: 3, kind: input, shape index: {}]   ;;  %s1020_s4 = inlined_call_operand.hbm [shape: bf16[32,96], index: 4, kind: input, shape index: {}]   ;;  %s1021_s5 = inlined_call_operand.vmem [shape: f32[1,96], index: 5, kind: input, shape index: {}]   ;;  %s1022_s6 = inlined_call_operand.vmem [shape: bf16[32,96], index: 6, kind: input, shape index: {}]   ;;  %s1023_s7 = inlined_call_operand.vmem [shape: f32[1,96], index: 7, kind: input, shape index: {}]   ;;  %s1024_s8 = inlined_call_operand.hbm [shape: bf16[32,128], index: 8, kind: input, shape index: {}]   ;;  %s1025_s9 = inlined_call_operand.vmem [shape: f32[1,128], index: 9, kind: input, shape index: {}]   ;;  %s1026_s10 = inlined_call_operand.hbm [shape: bf16[16,128], index: 10, kind: output, shape index: {0}]   ;;  %s1027_s11 = inlined_call_operand.hbm [shape: f32[16,32], index: 11, kind: output, shape index: {1}]  }
   0x1   :  { %18 = vsyncpa [#allocation6], 0 }
   0x2   :  { %19 = vsyncpa [#allocation9], 0 }
   0x3   :  { %20 = vsyncpa [#allocation4], 0 }
   0x4   :  { %21 = vsyncpa [#allocation13], 0  ;;  %s780_s17 = smov [#allocation5]   ;;  %s616_s21 = scalar_lea.hbm %s1017_s1, 256 }
   0x5   :  { %s39_s18 = sshll.u32 %s780_s17, 4  ;;  %p617_p0 = scmp.ne.s32.totalorder %s1017_s1, %s616_s21  ;;  %s40_s18 = int_to_ptr.vmem [resolvable:$true] %s39_s18 }
   0x6   :  { %p620_p1 = scmp.lt.u32.totalorder %s616_s21, %s1017_s1 }
   0x8   :  { %p622_p2 = pnand %p620_p1, %p617_p0 }
   0xa   :  { %625 = shalt.err (!%p622_p2)
}
   0xb   :  { %s626_s26 = scalar_lea.vmem %s40_s18, 256  ;;  %p631_p4 = scmp.lt.s32.totalorder %s40_s18, %s40_s18 }
   0xc   :  { %p627_p3 = scmp.ne.s32.totalorder %s40_s18, %s626_s26  ;;  %p632_p5 = scmp.lt.s32.totalorder %s626_s26, %s626_s26 }
   0xe   :  { %p633_p6 = por %p632_p5, %p631_p4 }
  0x10   :  { %p634_p7 = pnand %p633_p6, %p627_p3 }
  0x12   :  { %637 = shalt.err (!%p634_p7)
}
  0x13   :  { %s781_s27 = smov 128   ;;  %s782_s28 = smov 8  }
  0x14   :  { %45 = dma.hbm_to_vmem [thread:$0]  %s1017_s1, 256, %s40_s18, [#allocation6], %s781_s27, %s781_s27, %s782_s28  }
  0x15   :  { %s783_s12 = smov [#allocation8]   ;;  %s784_s14 = smov [#allocation2]  }
  0x16   :  { %s65_s13 = sshll.u32 %s783_s12, 4  ;;  %s27_s15 = sshll.u32 %s784_s14, 4  ;;  %s66_s13 = int_to_ptr.vmem [resolvable:$true] %s65_s13  ;;  %s28_s15 = int_to_ptr.vmem [resolvable:$true] %s27_s15 }
  0x17   :  { %s638_s19 = scalar_lea.hbm %s1020_s4, 256 }
  0x18   :  { %p639_p8 = scmp.ne.s32.totalorder %s1020_s4, %s638_s19  ;;  %p642_p9 = scmp.lt.u32.totalorder %s638_s19, %s1020_s4 }
  0x1a   :  { %p644_p10 = pnand %p642_p9, %p639_p8 }
  0x1c   :  { %647 = shalt.err (!%p644_p10)
}
  0x1d   :  { %s648_s1 = scalar_lea.vmem %s66_s13, 256  ;;  %p653_p12 = scmp.lt.s32.totalorder %s66_s13, %s66_s13 }
  0x1e   :  { %p649_p11 = scmp.ne.s32.totalorder %s66_s13, %s648_s1  ;;  %p654_p13 = scmp.lt.s32.totalorder %s648_s1, %s648_s1 }
  0x20   :  { %p655_p0 = por %p654_p13, %p653_p12 }
  0x22   :  { %p656_p1 = pnand %p655_p0, %p649_p11 }
  0x24   :  { %659 = shalt.err (!%p656_p1)
}
  0x25   :  { %s785_s18 = smov 64   ;;  %s786_s24 = smov 4  }
  0x26   :  { %71 = dma.hbm_to_vmem [thread:$0]  %s1020_s4, 256, %s66_s13, [#allocation9], %s785_s18, %s785_s18, %s786_s24  }
  0x27   :  { %s660_s12 = scalar_lea.hbm %s1016_s0, 256 }
  0x28   :  { %p661_p2 = scmp.ne.s32.totalorder %s1016_s0, %s660_s12  ;;  %p664_p3 = scmp.lt.u32.totalorder %s660_s12, %s1016_s0 }
  0x2a   :  { %p666_p4 = pnand %p664_p3, %p661_p2 }
  0x2c   :  { %669 = shalt.err (!%p666_p4)
}
  0x2d   :  { %s670_s20 = scalar_lea.vmem %s28_s15, 256  ;;  %p675_p6 = scmp.lt.s32.totalorder %s28_s15, %s28_s15 }
  0x2e   :  { %p671_p5 = scmp.ne.s32.totalorder %s28_s15, %s670_s20  ;;  %p676_p7 = scmp.lt.s32.totalorder %s670_s20, %s670_s20 }
  0x30   :  { %p677_p8 = por %p676_p7, %p675_p6 }
  0x32   :  { %p678_p9 = pnand %p677_p8, %p671_p5 }
  0x34   :  { %681 = shalt.err (!%p678_p9)
}
  0x35   :  { %33 = dma.hbm_to_vmem [thread:$0]  %s1016_s0, 256, %s28_s15, [#allocation3], %s781_s27, %s781_s27, %s782_s28  }
  0x36   :  { %s787_s21 = smov [#allocation7]   ;;  %s788_s23 = smov [#allocation10]  }
  0x37   :  { %s51_s22 = sshll.u32 %s787_s21, 4  ;;  %s83_s1 = sshll.u32 %s788_s23, 4  ;;  %s52_s22 = int_to_ptr.vmem [resolvable:$true] %s51_s22  ;;  %s84_s1 = int_to_ptr.vmem [resolvable:$true] %s83_s1 }
  0x38   :  { %s682_s29 = scalar_lea.hbm %s1018_s2, 256 }
  0x39   :  { %p683_p10 = scmp.ne.s32.totalorder %s1018_s2, %s682_s29  ;;  %p686_p11 = scmp.lt.u32.totalorder %s682_s29, %s1018_s2 }
  0x3b   :  { %p688_p12 = pnand %p686_p11, %p683_p10 }
  0x3d   :  { %691 = shalt.err (!%p688_p12)
}
  0x3e   :  { %s692_s0 = scalar_lea.vmem %s52_s22, 256  ;;  %p697_p0 = scmp.lt.s32.totalorder %s52_s22, %s52_s22 }
  0x3f   :  { %p693_p13 = scmp.ne.s32.totalorder %s52_s22, %s692_s0  ;;  %p698_p1 = scmp.lt.s32.totalorder %s692_s0, %s692_s0 }
  0x41   :  { %p699_p2 = por %p698_p1, %p697_p0 }
  0x43   :  { %p700_p3 = pnand %p699_p2, %p693_p13 }
  0x45   :  { %703 = shalt.err (!%p700_p3)
}
  0x46   :  { %57 = dma.hbm_to_vmem [thread:$0]  %s1018_s2, 256, %s52_s22, [#allocation6], %s785_s18, %s785_s18, %s786_s24  }
  0x47   :  { %s704_s4 = scalar_lea.hbm %s1024_s8, 256 }
  0x48   :  { %p705_p4 = scmp.ne.s32.totalorder %s1024_s8, %s704_s4  ;;  %p708_p5 = scmp.lt.u32.totalorder %s704_s4, %s1024_s8 }
  0x4a   :  { %p710_p6 = pnand %p708_p5, %p705_p4 }
  0x4c   :  { %713 = shalt.err (!%p710_p6)
}
  0x4d   :  { %s714_s26 = scalar_lea.vmem %s84_s1, 256  ;;  %p719_p8 = scmp.lt.s32.totalorder %s84_s1, %s84_s1 }
  0x4e   :  { %p715_p7 = scmp.ne.s32.totalorder %s84_s1, %s714_s26  ;;  %p720_p9 = scmp.lt.s32.totalorder %s714_s26, %s714_s26 }
  0x50   :  { %p721_p10 = por %p720_p9, %p719_p8 }
  0x52   :  { %p722_p11 = pnand %p721_p10, %p715_p7 }
  0x54   :  { %725 = shalt.err (!%p722_p11)
}
  0x55   :  { %89 = dma.hbm_to_vmem [thread:$0]  %s1024_s8, 256, %s84_s1, [#allocation9], %s785_s18, %s785_s18, %s786_s24  }
  0x56   :  { %770 = dma.done.wait [#allocation3], 256  }
  0x57   :  { %771 = vsyncadd [#allocation3], 4294967040 }
  0x58   :  { %772 = dma.done.wait [#allocation6], 512  }
  0x59   :  { %773 = vsyncadd [#allocation6], 4294966784 }
  0x5a   :  { %774 = dma.done.wait [#allocation9], 512  }
  0x5b   :  { %775 = vsyncadd [#allocation9], 4294966784  ;;  %v789_v0 = vmov 0.0   ;;  %vm790_vm0 = vmmov 0   ;;  %v596_v1 = vld [vmem:[#allocation7] sm:$0xff]   ;;  %v597_v2 = vld [vmem:[#allocation7 + $0x8] sm:$0xff]  }
  0x5c   :  { %550 = vmatprep.subr.bf16.mxu0 %v789_v0  ;;  %554 = vmatprep.mubr.msk.bf16.mxu0 %vm790_vm0, %v789_v0  ;;  %v108_v3 = vld [vmem:[#allocation2] sm:$0xff]  ;;  %v109_v4 = vld [vmem:[#allocation2 + $0x8] sm:$0xff]  ;;  %vm136_vm1 = vcmask 261120   ;;  %v946_v8 = vld [vmem:[#allocation5] sm:$0xff] }
  0x5d   :  { %558 = vmatprep.subr.bf16.mxu1 %v789_v0  ;;  %562 = vmatprep.mubr.msk.bf16.mxu1 %vm790_vm0, %v789_v0  ;;  %v110_v5 = vpack.c.bf16 %v109_v4, %v108_v3  ;;  %v598_v6 = vld [vmem:[%s1022_s6] sm:$0xff]   ;;  %v599_v7 = vld [vmem:[%s1022_s6 + $0x8] sm:$0xff]   ;;  %v948_v9 = vld [vmem:[#allocation5 + $0x8] sm:$0xff] }
  0x5e   :  { %551 = vmatpush3.bf16.msra.mxu0 %v596_v1  ;;  %v251_v10 = vpack.c.bf16 %v948_v9, %v946_v8  ;;  %v600_v11 = vld [vmem:[#allocation8] sm:$0xff]   ;;  %v601_v12 = vld [vmem:[#allocation8 + $0x8] sm:$0xff]   ;;  %v511_v13 = vld [vmem:[%s1019_s3] ss:$0 sm:$0xff] }
  0x5f   :  { %552 = vmatprep.subr.bf16.mxu0 %v789_v0  ;;  %559 = vmatpush3.bf16.msra.mxu1 %v600_v11  ;;  %v519_v22 = vld [vmem:[%s1023_s7] ss:$0 sm:$0xff]  ;;  %v603_v3 = vld [vmem:[#allocation10 + $0x8] sm:$0xff]   ;;  %s792_s7 = smov [#allocation12]  }
  0x60   :  { %560 = vmatprep.subr.bf16.mxu1 %v789_v0  ;;  %v515_v30 = vld [vmem:[%s1021_s5] ss:$0 sm:$0xff]  ;;  %s791_s5 = smov 32   ;;  %s493_s15 = sshll.u32 %s792_s7, 4  ;;  %s494_s15 = int_to_ptr.vmem [resolvable:$true] %s493_s15 }
  0x61   :  { %v602_v63 = vld [vmem:[#allocation10] sm:$0xff]   ;;  %s726_s17 = scalar_lea.vmem %s494_s15, 256  ;;  %p731_p13 = scmp.lt.s32.totalorder %s494_s15, %s494_s15 }
  0x62   :  { %553 = vmatpush3.bf16.msra.mxu0 %v597_v2  ;;  %p727_p12 = scmp.ne.s32.totalorder %s494_s15, %s726_s17  ;;  %p732_p0 = scmp.lt.s32.totalorder %s726_s17, %s726_s17 }
  0x63   :  { %566 = vmatprep.subr.bf16.mxu0 %v789_v0  ;;  %561 = vmatpush3.bf16.msra.mxu1 %v601_v12 }
  0x64   :  { %574 = vmatprep.subr.bf16.mxu1 %v789_v0  ;;  %p733_p1 = por %p732_p0, %p731_p13 }
  0x65   :  { %555 = vmatmul.mubr.msk.bf16.vlgmr.msra.gmra.mrb[0].mxu0 %vm136_vm1, %v110_v5 }
  0x66   :  { %567 = vmatpush3.bf16.msra.mxu0 %v598_v6  ;;  %570 = vmatprep.mubr.msk.bf16.mxu0 %vm790_vm0, %v789_v0  ;;  %p734_p2 = pnand %p733_p1, %p727_p12 }
  0x67   :  { %568 = vmatprep.subr.bf16.mxu0 %v789_v0 }
  0x6a   :  { %569 = vmatpush3.bf16.msra.mxu0 %v599_v7 }
  0x6d   :  { %571 = vmatmul.mubr.msk.bf16.vlgmr.msra.gmra.mrb[4].mxu0 %vm136_vm1, %v251_v10 }
 0x138   :  { %v174_v14 = vpop.f32.mrb[0].mxu0 }
 0x139   :  { %v175_v15 = vadd.f32 %v511_v13, %v174_v14  ;;  %v556_v16 = vpop.f32.mrb[1].mxu0 }
 0x13a   :  { %v177_v17 = vpop.f32.mrb[2].mxu0 }
 0x13b   :  { %v178_v18 = vadd.f32 %v511_v13, %v177_v17  ;;  %v557_v19 = vpop.f32.mrb[3].mxu0  ;;  %v181_v20 = vmax.f32 %v175_v15, 0.0 }
 0x13d   :  { %v182_v21 = vmax.f32 %v178_v18, 0.0 }
 0x13f   :  { %v183_v23 = vpack.c.bf16 %v182_v21, %v181_v20 }
 0x140   :  { %v312_v24 = vpop.f32.mrb[4].mxu0 }
 0x141   :  { %563 = vmatmul.mubr.msk.bf16.vlgmr.msra.gmra.mrb[0].mxu1 %vm136_vm1, %v183_v23  ;;  %v313_v25 = vadd.f32 %v519_v22, %v312_v24  ;;  %v572_v26 = vpop.f32.mrb[5].mxu0 }
 0x142   :  { %v315_v27 = vpop.f32.mrb[6].mxu0  ;;  %578 = vmatprep.mubr.msk.bf16.mxu1 %vm790_vm0, %v789_v0  ;;  %575 = vmatpush3.bf16.msra.mxu1 %v602_v63 }
 0x143   :  { %335 = vrot.lane.b32.xlu0 %v313_v25, %s785_s18  ;;  %v316_v28 = vadd.f32 %v519_v22, %v315_v27  ;;  %v573_v29 = vpop.f32.mrb[7].mxu0  ;;  %576 = vmatprep.subr.bf16.mxu1 %v789_v0 }
 0x146   :  { %577 = vmatpush3.bf16.msra.mxu1 %v603_v3 }
 0x147   :  { %337 = vrot.lane.b32.xlu0 %v316_v28, %s785_s18 }
 0x1b5   :  { %v336_v45 = vpop.permute.xlu0 %335 }
 0x1b9   :  { %v338_v49 = vpop.permute.xlu0 %337 }
 0x214   :  { %v244_v31 = vpop.f32.mrb[0].mxu1 }
 0x215   :  { %v245_v32 = vadd.f32 %v515_v30, %v244_v31  ;;  %v564_v33 = vpop.f32.mrb[1].mxu1 }
 0x216   :  { %v247_v34 = vpop.f32.mrb[2].mxu1 }
 0x217   :  { %v319_v35 = vadd.f32 %v313_v25, %v245_v32  ;;  %v248_v36 = vadd.f32 %v515_v30, %v247_v34  ;;  %v565_v37 = vpop.f32.mrb[3].mxu1 }
 0x219   :  { %v523_v38 = vmul.f32 -1.442695, %v319_v35  ;;  %v320_v39 = vadd.f32 %v316_v28, %v248_v36 }
 0x21b   :  { %604 = vpow2.f32 %v523_v38  ;;  %v524_v40 = vmul.f32 -1.442695, %v320_v39 }
 0x21d   :  { %606 = vpow2.f32 %v524_v40 }
 0x225   :  { %v605_v41 = vpop.eup %604 }
 0x226   :  { %v327_v42 = vadd.f32 1.0, %v605_v41 }
 0x227   :  { %v607_v43 = vpop.eup %606 }
 0x228   :  { %608 = vrcp.f32 %v327_v42  ;;  %v328_v44 = vadd.f32 1.0, %v607_v43 }
 0x22a   :  { %610 = vrcp.f32 %v328_v44 }
 0x232   :  { %v609_v46 = vpop.eup %608 }
 0x233   :  { %v341_v47 = vmul.f32 %v609_v46, %v336_v45 }
 0x234   :  { %v611_v48 = vpop.eup %610 }
 0x235   :  { %345 = vrot.lane.b32.xlu1 %v341_v47, %s785_s18  ;;  %v342_v50 = vmul.f32 %v611_v48, %v338_v49 }
 0x239   :  { %347 = vrot.lane.b32.xlu1 %v342_v50, %s785_s18 }
 0x2a7   :  { %v346_v51 = vpop.permute.xlu1 %345 }
 0x2a8   :  { %v351_v52 = vadd.f32 %v346_v51, %v245_v32 }
 0x2aa   :  { %612 = vtanh.f32 %v351_v52 }
 0x2ab   :  { %v348_v53 = vpop.permute.xlu1 %347 }
 0x2ac   :  { %v352_v54 = vadd.f32 %v348_v53, %v248_v36 }
 0x2ae   :  { %614 = vtanh.f32 %v352_v54 }
 0x2b4   :  { %v613_v55 = vpop.eup %612 }
 0x2b5   :  { %357 = vrot.lane.b32.xlu0 %v613_v55, %s785_s18 }
 0x2b8   :  { %v615_v56 = vpop.eup %614 }
 0x2b9   :  { %359 = vrot.lane.b32.xlu1 %v615_v56, %s785_s18 }
 0x327   :  { %v358_v57 = vpop.permute.xlu0 %357 }
 0x328   :  { %v363_v58 = vsub.f32 %v946_v8, %v358_v57 }
 0x32a   :  { %367 = vrot.lane.b32.xlu0 %v363_v58, %s791_s5 }
 0x32b   :  { %v360_v59 = vpop.permute.xlu1 %359 }
 0x32c   :  { %v364_v60 = vsub.f32 %v948_v9, %v360_v59 }
 0x32e   :  { %369 = vrot.lane.b32.xlu1 %v364_v60, %s791_s5 }
 0x39c   :  { %v368_v61 = vpop.permute.xlu0 %367 }
 0x39d   :  { %v373_v62 = vmul.f32 %v609_v46, %v368_v61 }
 0x39f   :  { %377 = vrot.lane.b32.xlu0 %v373_v62, %s791_s5 }
 0x3a0   :  { %v370_v1 = vpop.permute.xlu1 %369 }
 0x3a1   :  { %v374_v2 = vmul.f32 %v611_v48, %v370_v1 }
 0x3a3   :  { %379 = vrot.lane.b32.xlu1 %v374_v2, %s791_s5 }
 0x411   :  { %v378_v4 = vpop.permute.xlu0 %377 }
 0x412   :  { %v383_v5 = vadd.f32 %v613_v55, %v378_v4 }
 0x414   :  { %468 = vrot.lane.b32.xlu1 %v383_v5, %s785_s18 }
 0x415   :  { %v380_v6 = vpop.permute.xlu1 %379 }
 0x416   :  { %v384_v7 = vadd.f32 %v615_v56, %v380_v6 }
 0x418   :  { %v385_v8 = vpack.c.bf16 %v384_v7, %v383_v5 }
 0x41a   :  { %398 = vrot.lane.b32.xlu0 %v385_v8, %s785_s18 }
 0x41e   :  { %470 = vrot.lane.b32.xlu0 %v384_v7, %s785_s18 }
 0x486   :  { %v469_v9 = vpop.permute.xlu1 %468 }
 0x487   :  { %474 = vst.msk [vmem:[#allocation12] sm:$0xff] %vm136_vm1, %v469_v9 }
 0x48c   :  { %v399_v10 = vpop.permute.xlu0 %398 }
 0x48d   :  { %579 = vmatmul.mubr.msk.bf16.vlgmr.msra.gmra.mrb[4].mxu1 %vm136_vm1, %v399_v10 }
 0x490   :  { %v471_v0 = vpop.permute.xlu0 %470 }
 0x491   :  { %475 = vst.msk [vmem:[#allocation12 + $0x8] sm:$0xff] %vm136_vm1, %v471_v0 }
 0x492   :  { %737 = shalt.err (!%p734_p2)
}
 0x493   :  { %s738_s4 = scalar_lea.hbm %s1027_s11, 256 }
 0x494   :  { %p739_p3 = scmp.ne.s32.totalorder %s1027_s11, %s738_s4  ;;  %p742_p4 = scmp.lt.u32.totalorder %s738_s4, %s1027_s11 }
 0x496   :  { %p744_p5 = pnand %p742_p4, %p739_p3 }
 0x498   :  { %747 = shalt.err (!%p744_p5)
}
 0x499   :  { %499 = dma.vmem_to_hbm [thread:$0]  %s494_s15, 256, %s1027_s11, [#allocation13], %s781_s27, %s781_s27, %s782_s28  }
 0x49a   :  { %v525_v11 = vld [vmem:[%s1025_s9] ss:$0 sm:$0xff]  ;;  %s793_s1 = smov [#allocation11]  }
 0x49b   :  { %s481_s29 = sshll.u32 %s793_s1, 4  ;;  %s482_s29 = int_to_ptr.vmem [resolvable:$true] %s481_s29 }
 0x49c   :  { %s748_s30 = scalar_lea.vmem %s482_s29, 128  ;;  %p753_p7 = scmp.lt.s32.totalorder %s482_s29, %s482_s29 }
 0x49d   :  { %p749_p6 = scmp.ne.s32.totalorder %s482_s29, %s748_s30  ;;  %p754_p8 = scmp.lt.s32.totalorder %s748_s30, %s748_s30 }
 0x49f   :  { %p755_p9 = por %p754_p8, %p753_p7 }
 0x4a1   :  { %p756_p10 = pnand %p755_p9, %p749_p6 }
 0x560   :  { %v449_v12 = vpop.f32.mrb[4].mxu1 }
 0x561   :  { %v580_v13 = vpop.f32.mrb[5].mxu1  ;;  %v450_v15 = vadd.f32 %v525_v11, %v449_v12 }
 0x562   :  { %v452_v14 = vpop.f32.mrb[6].mxu1 }
 0x563   :  { %v453_v16 = vadd.f32 %v525_v11, %v452_v14  ;;  %v581_v17 = vpop.f32.mrb[7].mxu1 }
 0x565   :  { %v536_v18 = vpack.c.bf16 %v453_v16, %v450_v15 }
 0x567   :  { %537 = vst [vmem:[#allocation11] sm:$0xff] %v536_v18  }
 0x568   :  { %759 = shalt.err (!%p756_p10)
}
 0x569   :  { %s760_s27 = scalar_lea.hbm %s1026_s10, 128 }
 0x56a   :  { %p761_p11 = scmp.ne.s32.totalorder %s1026_s10, %s760_s27  ;;  %p764_p12 = scmp.lt.u32.totalorder %s760_s27, %s1026_s10 }
 0x56c   :  { %p766_p13 = pnand %p764_p12, %p761_p11 }
 0x56e   :  { %769 = shalt.err (!%p766_p13)
}
 0x56f   :  { %487 = dma.vmem_to_hbm [thread:$0]  %s482_s29, 128, %s1026_s10, [#allocation4], %s785_s18, %s785_s18, %s786_s24  }
 0x570   :  { %776 = dma.done.wait [#allocation4], 128  }
 0x571   :  { %777 = vsyncadd [#allocation4], 4294967168 }
 0x572   :  { %778 = dma.done.wait [#allocation13], 256  }
 0x573   :  { %779 = vsyncadd [#allocation13], 4294967040 }
 0x574   :  { %506 = vsyncpa [#allocation3], 1 }
 0x575   :  { %507 = vsyncpa [#allocation6], 1 }
 0x576   :  { %508 = vsyncpa [#allocation9], 1 }
 0x577   :  { %509 = vsyncpa [#allocation4], 1 }
 0x578   :  { %510 = vsyncpa [#allocation13], 1 }

</bundles_post_ra>
